<compile_context>
chip_gen: v5e
topology: v5e:2x2
jax: 0.10.0
libtpu: 0.0.40
codegen_flags: <defaults>
</compile_context>

<pallas_src>
import functools

import jax
import jax.numpy as jnp
from jax.experimental import pallas as pl
from jax.experimental.pallas import tpu as pltpu

_LANE = 128
_BLOCK_BYTE_BUDGET = 4 * 1024 * 1024   # per input block (in+out double-buffered ~4x this)
_VMEM_LIMIT_BYTES = 48 * 1024 * 1024   # < v7x's 64 MiB physical; raises v5e's 16 MiB default
_MIN_GRID_STEPS = 8                    # keep both v7x TCs fed + DMA/compute overlap


def _normalize_kernel(x_ref, o_ref, *, p, eps):
    # x_ref / o_ref: (C, tn) tile; normalize every lane column over C (sublanes).
    eps = jnp.float32(eps)
    if p == 2:
        xf = x_ref[...].astype(jnp.float32)
        ss = jnp.sum(xf * xf, axis=0, keepdims=True)                       # (1, tn)
        # 1/max(sqrt(ss), eps) == rsqrt(max(ss, eps^2))  (sqrt is monotone,
        # eps^2 = 1e-16 is a normal f32) -> single EUP op, no VPU divide.
        inv = jax.lax.rsqrt(jnp.maximum(ss, eps * eps))
    elif p == 1:
        norm = jnp.sum(jnp.abs(x_ref[...].astype(jnp.float32)), axis=0, keepdims=True)
        inv = 1.0 / jnp.maximum(norm, eps)
    elif float(p) == float(int(p)) and p > 0:
        ax = jnp.abs(x_ref[...].astype(jnp.float32))
        acc = ax
        for _ in range(int(p) - 1):    # integer p: repeated multiply, no per-element power
            acc = acc * ax
        norm = jnp.power(jnp.sum(acc, axis=0, keepdims=True), 1.0 / p)     # (1, tn) only
        inv = 1.0 / jnp.maximum(norm, eps)
    else:
        norm = jnp.power(
            jnp.sum(jnp.abs(x_ref[...].astype(jnp.float32)) ** p, axis=0, keepdims=True),
            1.0 / p)
        inv = 1.0 / jnp.maximum(norm, eps)
    # Re-read the tile for the scale: keeps the f32 upcast's live range short
    # (VMEM re-loads are cheap; spills at multi-MiB tiles are not).
    o_ref[...] = (x_ref[...].astype(jnp.float32) * inv).astype(o_ref.dtype)


def _pick_tile(n, c, itemsize, batch):
    """VMEM-budgeted, lane-aligned tile size along the spatial (lane) axis."""
    if n < _LANE:
        return n                         # tiny extent: one full-extent block
    tn = max((_BLOCK_BYTE_BUDGET // max(c * itemsize, 1)) // _LANE, 1) * _LANE
    n_up = pl.cdiv(n, _LANE) * _LANE     # never exceed the lane-rounded extent
    tn = min(tn, n_up)
    # Keep at least a handful of grid steps (megacore sharding + pipelining).
    while batch * pl.cdiv(n, tn) < _MIN_GRID_STEPS and tn > _LANE:
        tn = max(((tn // 2) // _LANE) * _LANE, _LANE)
    return tn


def normalize_forward(x, p=2, dim=1, eps=1e-8):
    """L_p normalization over `dim` (F.normalize semantics)."""
    dim = dim % x.ndim
    # TODO(synk): dim == last axis would put the reduction on the lane axis;
    # not implemented (the module defaults to dim=1).
    assert dim != x.ndim - 1, "normalize over the last axis not supported"

    B = 1
    for s in x.shape[:dim]:
        B *= s
    C = x.shape[dim]
    N = 1
    for s in x.shape[dim + 1:]:
        N *= s

    x3 = x.reshape(B, C, N)              # view-only flatten: no transpose
    itemsize = jnp.dtype(x.dtype).itemsize
    tn = _pick_tile(N, C, itemsize, B)
    grid = (B, pl.cdiv(N, tn))           # ragged last block is masked by Pallas

    kernel = functools.partial(_normalize_kernel, p=p, eps=eps)

    out = pl.pallas_call(
        kernel,
        out_shape=jax.ShapeDtypeStruct((B, C, N), x.dtype),
        grid_spec=pltpu.PrefetchScalarGridSpec(
            num_scalar_prefetch=0,
            grid=grid,
            # NOTE: if a v7x profile still shows exposed DMA, add
            # pipeline_mode=pl.Buffered(3) to the input spec (fits the budget).
            in_specs=[pl.BlockSpec((None, C, tn), lambda b, i: (b, 0, i))],
            out_specs=pl.BlockSpec((None, C, tn), lambda b, i: (b, 0, i)),
        ),
        compiler_params=pltpu.CompilerParams(
            dimension_semantics=("parallel", "parallel"),
            vmem_limit_bytes=_VMEM_LIMIT_BYTES,
        ),
        cost_estimate=pl.CostEstimate(
            flops=3 * B * C * N,          # square + accumulate + scale
            transcendentals=B * N,        # one rsqrt per lane column
            bytes_accessed=2 * B * C * N * itemsize,
        ),
    )(x3)

    return out.reshape(x.shape)


def normalize_reference(x, p=2, dim=1, eps=1e-8):
    """Pure-JAX reference of F.normalize(x, p, dim, eps)."""
    xf = x.astype(jnp.float32)
    norm = jnp.sum(jnp.abs(xf) ** p, axis=dim, keepdims=True) ** (1.0 / p)
    return (xf / jnp.maximum(norm, eps)).astype(x.dtype)


if __name__ == "__main__":
    key = jax.random.PRNGKey(0)
    k1, k2 = jax.random.split(key)

    # Case 1: module-default configuration (p=2, dim=1) on a small NCHW tensor.
    B, C, H, W = 2, 4, 16, 16
    x = jax.random.normal(k1, (B, C, H, W), dtype=jnp.float32)
    # Exercise the eps path: one all-zero channel vector (norm == 0 -> clamp to eps).
    x = x.at[0, :, 0, 0].set(0.0)

    out = normalize_forward(x)
    jax.block_until_ready(out)
    ref = normalize_reference(x)
    assert out.shape == x.shape
    assert jnp.allclose(out, ref, atol=1e-5, rtol=1e-5)
    # Zero subtensor stays zero (divided by eps, not by 0).
    assert jnp.allclose(out[0, :, 0, 0], jnp.zeros((C,), dtype=out.dtype))

    # Case 2: ragged spatial extent (N = 14*14 = 196, not a multiple of 128)
    # -> exercises the cdiv grid + masked last block.
    x2 = jax.random.normal(k2, (2, 3, 14, 14), dtype=jnp.float32)
    out2 = normalize_forward(x2)
    jax.block_until_ready(out2)
    assert jnp.allclose(out2, normalize_reference(x2), atol=1e-5, rtol=1e-5)

    print("KERNEL_OK")
</pallas_src>

<mosaic_0001>
module attributes {stable_mosaic.version = 11 : i64} {
  func.func @_normalize_kernel(%arg0: i32, %arg1: i32, %arg2: memref<1x4x128xf32, #tpu.memory_space<vmem>>, %arg3: memref<1x4x128xf32, #tpu.memory_space<vmem>>) attributes {dimension_semantics = [#tpu.dimension_semantics<parallel>, #tpu.dimension_semantics<parallel>], iteration_bounds = array<i64: 2, 2>, scalar_prefetch = 0 : i64, scratch_operands = 0 : i64, tpu.core_type = #tpu.core_type<tc>, window_params = [{transform_indices = @transform_0, window_bounds = array<i64: 1, 4, 128>}, {transform_indices = @transform_1, window_bounds = array<i64: 1, 4, 128>}]} {
    %c0 = arith.constant 0 : index
    %c0_0 = arith.constant 0 : index
    %c0_1 = arith.constant 0 : index
    %0 = vector.load %arg2[%c0, %c0_0, %c0_1] : memref<1x4x128xf32, #tpu.memory_space<vmem>>, vector<1x4x128xf32>
    %1 = vector.shape_cast %0 : vector<1x4x128xf32> to vector<4x128xf32>
    %2 = arith.mulf %1, %1 : vector<4x128xf32>
    %cst = arith.constant dense<0.000000e+00> : vector<128xf32>
    %3 = vector.multi_reduction <add>, %2, %cst [0] : vector<4x128xf32> to vector<128xf32>
    %4 = vector.shape_cast %3 : vector<128xf32> to vector<1x128xf32>
    %cst_2 = arith.constant 9.99999993E-9 : f32
    %cst_3 = arith.constant 9.99999993E-9 : f32
    %5 = arith.mulf %cst_2, %cst_3 : f32
    %6 = vector.broadcast %5 : f32 to vector<1x128xf32>
    %7 = arith.maximumf %4, %6 : vector<1x128xf32>
    %8 = math.rsqrt %7 : vector<1x128xf32>
    %c0_4 = arith.constant 0 : index
    %c0_5 = arith.constant 0 : index
    %c0_6 = arith.constant 0 : index
    %9 = vector.load %arg2[%c0_4, %c0_5, %c0_6] : memref<1x4x128xf32, #tpu.memory_space<vmem>>, vector<1x4x128xf32>
    %10 = vector.shape_cast %9 : vector<1x4x128xf32> to vector<4x128xf32>
    %11 = vector.broadcast %8 : vector<1x128xf32> to vector<4x128xf32>
    %12 = arith.mulf %10, %11 : vector<4x128xf32>
    %c0_7 = arith.constant 0 : index
    %c0_8 = arith.constant 0 : index
    %c0_9 = arith.constant 0 : index
    %13 = vector.load %arg3[%c0_7, %c0_8, %c0_9] : memref<1x4x128xf32, #tpu.memory_space<vmem>>, vector<1x4x128xf32>
    %14 = vector.shape_cast %13 : vector<1x4x128xf32> to vector<4x128xf32>
    %15 = vector.shape_cast %12 : vector<4x128xf32> to vector<1x4x128xf32>
    tpu.vector_store %arg3[%c0_7, %c0_8, %c0_9], %15 {strides = array<i32>} : memref<1x4x128xf32, #tpu.memory_space<vmem>>, vector<1x4x128xf32>,
    return
  }
  func.func @transform_0(%arg0: i32, %arg1: i32) -> (i32, i32, i32) {
    %c0_i32 = arith.constant 0 : i32
    %c0_i32_0 = arith.constant 0 : i32
    return %arg0, %c0_i32, %arg1 : i32, i32, i32
  }
  func.func @transform_1(%arg0: i32, %arg1: i32) -> (i32, i32, i32) {
    %c0_i32 = arith.constant 0 : i32
    %c0_i32_0 = arith.constant 0 : i32
    return %arg0, %c0_i32, %arg1 : i32, i32, i32
  }
}

</mosaic_0001>

<bundles_post_ra>
// kernel: tpu_custom_call.1
= control target key start
LH: loop header
LB: loop body
LE: loop exit
PB: predicated region body
PF: predicated region fallthrough
CT: control target
= control target key end

     0   :  { %6 = vsyncpa [#allocation3], 0  ;;  %s655_s0 = inlined_call_operand.hbm [shape: f32[2,4,256], index: 0, kind: input, shape index: {}]   ;;  %s656_s1 = inlined_call_operand.hbm [shape: f32[2,4,256], index: 1, kind: output, shape index: {}]  }
   0x1   :  { %8 = vsyncpa [#allocation3 + $0x1], 0 }
   0x2   :  { %9 = vsyncpa [#allocation4], 0 }
   0x3   :  { %11 = vsyncpa [#allocation4 + $0x1], 0  ;;  %s513_s6 = smov 0   ;;  %s515_s7 = smov 0  }
   0x4   :  { %s517_s8 = smov 0   ;;  %s519_s9 = smov 0  }
   0x5   :  { %s521_s10 = smov 0   ;;  %s523_s11 = smov 0  }
   0x6   :  { %s525_s12 = smov 0   ;;  %s527_s13 = smov 0  }
   0x7 LB: > { %s278_s14 = sadd.s32 4294967295, %s501_s13   ;;  %s279_s15 = sadd.s32 4294967294, %s501_s13   ;;  %s501_s13 = sphi %s527_s13, %s17_s13   ;;  %s497_s12 = sphi %s525_s12, %s667_s12   ;;  %s493_s11 = sphi %s523_s11, %s666_s11   ;;  %s489_s10 = sphi %s521_s10, %s665_s10   ;;  %s485_s9 = sphi %s519_s9, %s664_s9   ;;  %s481_s8 = sphi %s517_s8, %s663_s8   ;;  %s477_s7 = sphi %s515_s7, %s662_s7   ;;  %s473_s6 = sphi %s513_s6, %s661_s6  }
   0x8   : > { %s26_s16 = sadd.s32 1, %s493_s11  ;;  %s29_s17 = sadd.s32 1, %s497_s12 }
   0x9   : > { %p27_p0 = scmp.ge.s32.totalorder %s26_s16, 2  ;;  %s38_s18 = sadd.s32 1, %s481_s8 }
   0xa   : > { %p45_p1 = scmp.ne.s32.totalorder %s481_s8, %s477_s7  ;;  %p46_p2 = scmp.eq.s32.totalorder %s501_s13, 0 }
   0xb   : > { %s669_s16 = smov (%p27_p0, %s26_s16), 0  ;;  %s671_s17 = smov (!%p27_p0, %s29_s17), %s497_s12 }
   0xc   : > { %s34_s19 = ssub.s32 %s493_s11, %s669_s16  ;;  %p566_p3 = por %p46_p2, %p45_p1 }
   0xd   : > { %p31_p4 = scmp.ge.s32.totalorder %s671_s17, 2  ;;  %p51_p5 = scmp.ne.s32.totalorder %s477_s7, %s473_s6 }
   0xe   : > { %p52_p6 = scmp.eq.s32.totalorder %s278_s14, 0  ;;  %p77_p7 = scmp.eq.s32.totalorder %s278_s14, 3 }
   0xf   : > { %s673_s17 = smov (%p31_p4, %s671_s17), 0  ;;  %p83_p10 = scmp.eq.s32.totalorder %s279_s15, 3 }
  0x10   : > { %p574_p8 = por %p52_p6, %p51_p5  ;;  %p578_p9 = por %p77_p7, %p45_p1 }
  0x11   : > { %s33_s23 = ssub.s32 %s497_s12, %s673_s17  ;;  %p584_p12 = por %p83_p10, %p51_p5 }
  0x12   : > { %s35_s24 = sor.u32 %s34_s19, %s33_s23  ;;  %p305_p13 = scmp.lt.s32.totalorder %s501_s13, 4 }
  0x13   : > { %p36_p11 = scmp.eq.s32.totalorder %s35_s24, 0  ;;  %s103_s26 = sand.u32 1, %s481_s8  }
  0x14   : > { %s282_s28 = sshll.u32 %s103_s26, 2  ;;  %s283_s29 = sshll.u32 %s497_s12, 1 }
  0x15   : > { %s591_s27 = scalar_select %p36_p11, %s481_s8, %s38_s18  }
  0x16   : > { %s111_s30 = sadd.s32 %s493_s11, %s283_s29  ;;  %s107_s2 = scalar_lea.vmem [#allocation2], %s282_s28 }
  0x17   : > { %s117_s3 = sshll.u32 %s107_s2, 4  ;;  %s284_s4 = sshll.u32 %s111_s30, 2  ;;  %s118_s3 = int_to_ptr.vmem [resolvable:$true] %s117_s3 }
  0x18   : > { %s113_s15 = scalar_lea.hbm %s655_s0, %s284_s4  ;;  %p298_p0 = pnand %p305_p13, %p566_p3 }
  0x19   : > { %s115_s19 = sshll.u32 %s113_s15, 4  ;;  %p285_p1 = scmp.ge.s32.totalorder %s501_s13, 1  ;;  %s116_s19 = int_to_ptr.hbm [resolvable:$true] %s115_s19 }
  0x1a   : > { %s104_s23 = scalar_lea.sflag [#allocation3], %s103_s26  ;;  %p122_p2 = scmp.lt.s32.totalorder %s501_s13, 5 }
  0x1b   : > { %300 = dma.hbm_to_vmem [thread:$0]  (!%p298_p0), %s116_s19, 64, %s118_s3, %s104_s23  }
  0x1c   : > { %p123_p4 = pnand %p285_p1, %p122_p2 }
  0x1d   : > { %s603_s18 = sand.u32 (!%p123_p4), 1, %s477_s7  }
  0x1e   : > { %126 = sbr.rel (%p123_p4) target bundleno = 77 (0x4d), region = 24  ;;  %s286_s24 = sshll.u32 (!%p123_p4), %s603_s18, 2 }
  0x1f   : > { %s129_s28 = scalar_lea.sflag (!%p123_p4), [#allocation3], %s603_s18  ;;  %s132_s29 = scalar_lea.vmem (!%p123_p4), [#allocation2], %s286_s24 }
  0x23   : > { %464 = dma.done.wait (%p574_p8), %s129_s28, 64  }
  0x24   : > { %466 = vsyncadd (%p574_p8), %s129_s28, 4294967232  ;;  %v152_v0 = vld [vmem:[%s132_s29] sm:$0xf]  ;;  %vm154_vm0 = vcmask 1043456   ;;  %s289_s20 = sshll.u32 %s489_s10, 1  ;;  %s151_s4 = scalar_lea.vmem [#allocation5], %s286_s24 }
  0x25   : > { %v153_v1 = vmul.f32 %v152_v0, %v152_v0  ;;  %s186_s26 = sadd.s32 %s485_s9, %s289_s20  ;;  %s190_s5 = sshll.u32 %s151_s4, 4  ;;  %s191_s5 = int_to_ptr.vmem [resolvable:$true] %s190_s5 }
  0x26   : > { %s290_s21 = sshll.u32 %s186_s26, 2  ;;  %s176_s9 = scalar_lea.sflag [#allocation4], %s603_s18 }
  0x27   : > { %v155_v2 = vsel %vm154_vm0, %v153_v1, 0.0  ;;  %s188_s3 = scalar_lea.hbm %s656_s1, %s290_s21  ;;  %s423_s28 = scalar_lea.hbm %s656_s1, 16 }
  0x28   : > { %v156_v3 = vrot.slane %v155_v2, 4  ;;  %s192_s10 = sshll.u32 %s188_s3, 4  ;;  %s193_s10 = int_to_ptr.hbm [resolvable:$true] %s192_s10 }
  0x29   : > { %s417_s14 = sshra.s32 %s193_s10, 4  ;;  %s418_s14 = int_to_ptr.hbm [resolvable:$true] %s417_s14 }
  0x2a   : > { %v157_v4 = vadd.f32 %v156_v3, %v155_v2  ;;  %s419_s15 = scalar_lea.hbm %s418_s14, 4  ;;  %p424_p7 = scmp.lt.s32.totalorder %s418_s14, %s656_s1 }
  0x2b   : > { %p420_p3 = scmp.ne.s32.totalorder %s418_s14, %s419_s15  ;;  %p425_p8 = scmp.lt.s32.totalorder %s423_s28, %s419_s15 }
  0x2c   : > { %v158_v5 = vrot.slane %v157_v4, 2 }
  0x2d   : > { %p421_p5 = pnand %p420_p3, %p578_p9  ;;  %p426_p10 = por %p425_p8, %p424_p7 }
  0x2e   : > { %v159_v6 = vadd.f32 %v158_v5, %v157_v4 }
  0x2f   : > { %p422_p6 = pneg %p421_p5 }
  0x30   : > { %v160_v7 = vrot.slane %v159_v6, 1 }
  0x31   : > { %p427_p11 = pnand %p426_p10, %p422_p6 }
  0x32   : > { %v161_v8 = vadd.f32 %v160_v7, %v159_v6 }
  0x34   : > { %v162_v9 = vmax.f32 %v161_v8, 1e-16 }
  0x36   : > { %371 = vrsqrt.f32 %v162_v9  ;;  %vm169_vm1 = vweird.f32 %v162_v9 }
  0x3c   : > { %v372_v10 = vpop.eup %371 }
  0x3d   : > { %v164_v11 = vmul.f32 %v372_v10, %v162_v9  ;;  %vm170_vm2 = vweird.f32 %v372_v10 }
  0x3e   : > { %vm171_vm3 = vmor %vm169_vm1, %vm170_vm2 }
  0x3f   : > { %v165_v12 = vmul.f32 %v372_v10, %v164_v11 }
  0x41   : > { %v166_v13 = vmul.f32 0.5, %v165_v12 }
  0x43   : > { %v167_v14 = vsub.f32 1.5, %v166_v13 }
  0x45   : > { %v168_v15 = vmul.f32 %v372_v10, %v167_v14 }
  0x47   : > { %v172_v16 = vsel %vm171_vm3, %v372_v10, %v168_v15 }
  0x48   : > { %v173_v17 = vmul.f32 %v172_v16, %v152_v0 }
  0x4a   : > { %174 = vst [vmem:[%s151_s4] sm:$0xf] %v173_v17 }
  0x4b   : > { %430 = shalt.err (!%p427_p11)
}
  0x4c   : > { %295 = dma.vmem_to_hbm [thread:$0]  (%p578_p9), %s191_s5, 64, %s193_s10, %s176_s9  }
  0x4d PF: > { %p306_p13 = scmp.ge.s32.totalorder %s501_s13, 2  ;;  %s204_s18 = sand.u32 1, %s473_s6  }
  0x4e   : > { %s205_s20 = scalar_lea.sflag [#allocation4], %s204_s18 }
  0x4f   : > { %p302_p0 = pnand %p306_p13, %p584_p12 }
  0x51   : > { %p303_p1 = pneg %p302_p0 }
  0x53   : > { %468 = dma.done.wait (%p303_p1), %s205_s20, 64  }
  0x54   : > { %470 = vsyncadd (%p303_p1), %s205_s20, 4294967232  ;;  %s17_s13 = sadd.s32 1, %s501_s13   ;;  %s661_s6 = smov %s477_s7 }
  0x55   : > { %p14_p2 = scmp.ge.s32.totalorder %s17_s13, 6   ;;  %s662_s7 = smov %s481_s8 }
  0x56   : > { %s663_s8 = smov %s591_s27  ;;  %s664_s9 = smov %s493_s11 }
  0x57   : > { %s665_s10 = smov %s497_s12  ;;  %s666_s11 = smov %s669_s16 }
  0x58   : > { %s667_s12 = smov %s673_s17  ;;  %16 = sbr.rel (!%p14_p2) target bundleno = 7 (0x7), region = 69 }
  0x5d   :  { %211 = vsyncpa [#allocation3], 1 }
  0x5e   :  { %213 = vsyncpa [#allocation3 + $0x1], 1 }
  0x5f   :  { %214 = vsyncpa [#allocation4], 1 }
  0x60   :  { %216 = vsyncpa [#allocation4 + $0x1], 1 }

</bundles_post_ra>
